<compile_context>
chip_gen: v6e
topology: v6e:2x2x1
jax: 0.10.0
libtpu: 0.0.40
codegen_flags: <defaults>
</compile_context>

<pallas_src>
import functools

import numpy as np
import jax
import jax.numpy as jnp
from jax import lax
from jax.experimental import pallas as pl
from jax.experimental.pallas import tpu as pltpu


def _round_up(x, m):
    return (x + m - 1) // m * m


def _choose_tiles(n):
    """(n_pad, row_tile, col_tile).

    Keeps >= 2 row tiles (v7x has 2 TensorCores; row axis is 'parallel') and
    uses large column tiles so the ~0.35us/step grid overhead is amortized.
    Extra padding is cheap: all-zero tiles are skipped by the block-sparse
    schedule (never DMA'd, never computed).
    """
    if n <= 256:
        return 256, 128, 256
    return _round_up(n, 512), 256, 512


# ----------------------------------------------------------------------------
# Kernel A: fused multi-head projection  Wh = LeakyReLU(x @ W_all)  +  e2^T
# ----------------------------------------------------------------------------
def gat_proj_kernel(x_ref, w_ref, a2sel_ref, wh_ref, e2t_ref, *, alpha):
    # bf16 MXU operands, f32 accumulation.
    wh = jnp.dot(x_ref[...].astype(jnp.bfloat16), w_ref[...],
                 preferred_element_type=jnp.float32)
    wh = jnp.where(wh >= 0.0, wh, alpha * wh)            # LeakyReLU (reference order)
    wh_ref[...] = wh.astype(jnp.bfloat16)                # bf16 value stream (review)

    # e2t[h, r] = <Wh[r, head h], a2_h>, produced directly transposed and
    # lane-dense via a block-diagonal selection matrix (thin f32 matmul).
    # e1 is NOT computed: it is constant per row and cancels in the softmax.
    e2t_ref[...] = lax.dot_general(
        a2sel_ref[...], wh,
        dimension_numbers=(((1,), (1,)), ((), ())),
        preferred_element_type=jnp.float32)


# ----------------------------------------------------------------------------
# Kernel B: block-sparse masked-attention matmul, all heads fused.
#   acc[:, :hf]   = A_tile @ (scale * Wh)      (per-head value accumulation)
#   acc[:, hf: ]  = A_tile @ scale             (softmax denominators)
# ----------------------------------------------------------------------------
def gat_attn_kernel(cols_ref, cnts_ref, adj_ref, sext_ref, out_ref, acc_sc,
                    *, tj, max_cnt, nheads, out_f, apply_log_softmax):
    i = pl.program_id(0)
    j = pl.program_id(1)
    hf = nheads * out_f

    @pl.when(j == 0)
    def _init():
        acc_sc[...] = jnp.zeros_like(acc_sc)

    # Only real (non-empty) column tiles do work; padded schedule slots repeat
    # the previous block index so their DMA was already skipped by pipelining.
    @pl.when(j < cnts_ref[i])
    def _update():
        # int8 0/1 adjacency -> bf16 MXU operand (i8 -> f32 -> bf16 cast).
        a = adj_ref[...].astype(jnp.float32).astype(jnp.bfloat16)   # (ti, tj)
        jj = cols_ref[i * max_cnt + j]                                # actual col tile
        off = pl.multiple_of(jj * tj, tj)
        s = sext_ref[pl.ds(off, tj), :]                               # (tj, hf+nheads)
        acc_sc[...] += jnp.dot(a, s, preferred_element_type=jnp.float32)

    @pl.when(j == max_cnt - 1)
    def _finalize():
        acc = acc_sc[...]
        cols = []
        for h in range(nheads):                     # finalize-only, once per row tile
            lh = acc[:, hf + h:hf + h + 1]          # softmax denominator, head h
            vh = acc[:, h * out_f:(h + 1) * out_f]
            has_edge = lh > 0.0                     # torch.sparse: empty row -> 0
            cols.append(jnp.where(has_edge, vh / jnp.where(has_edge, lh, 1.0), 0.0))
        hp = cols[0] if nheads == 1 else jnp.concatenate(cols, axis=1)
        # ELU (applied by both layers in the reference)
        hp = jnp.where(hp > 0.0, hp, jnp.exp(jnp.minimum(hp, 0.0)) - 1.0)
        if apply_log_softmax:
            mx = jnp.max(hp, axis=1, keepdims=True)
            hp = hp - (jnp.log(jnp.sum(jnp.exp(hp - mx), axis=1, keepdims=True)) + mx)
        out_ref[...] = hp.astype(out_ref.dtype)


# ----------------------------------------------------------------------------
# One GAT layer (all heads fused) = projection call + block-sparse matmul call
# ----------------------------------------------------------------------------
def gat_layer(x, w_all, a2_sel, adj_i8, cols, cnts, *, n_valid, alpha,
              apply_log_softmax, ti, tj, max_cnt, nnz_tiles, out_dtype):
    n_pad, in_f = x.shape
    nheads, hf = a2_sel.shape
    out_f = hf // nheads
    ni = n_pad // ti
    hf_ext = hf + nheads

    wh, e2t = pl.pallas_call(
        functools.partial(gat_proj_kernel, alpha=alpha),
        grid=(ni,),
        in_specs=[
            pl.BlockSpec((ti, in_f), lambda i: (i, 0)),
            pl.BlockSpec((in_f, hf), lambda i: (0, 0)),
            pl.BlockSpec((nheads, hf), lambda i: (0, 0)),
        ],
        out_specs=[
            pl.BlockSpec((ti, hf), lambda i: (i, 0)),
            pl.BlockSpec((nheads, ti), lambda i: (0, i)),
        ],
        out_shape=[
            jax.ShapeDtypeStruct((n_pad, hf), jnp.bfloat16),     # Wh (values), bf16
            jax.ShapeDtypeStruct((nheads, n_pad), jnp.float32),  # e2^T, lane-dense
        ],
        compiler_params=pltpu.CompilerParams(
            dimension_semantics=("parallel",),
            vmem_limit_bytes=32 * 1024 * 1024),
    )(x, w_all.astype(jnp.bfloat16), a2_sel)

    # Tiny O(N * hf) glue in plain JAX: the per-column softmax factor
    # exp(e2_j - max_h) computed once per head (N*nheads exps total), folded
    # into the value matrix and appended as the "ones" columns so a single
    # MXU matmul yields both the weighted sum and the denominator.
    cmax = jnp.max(e2t[:, :n_valid], axis=1, keepdims=True)        # (nheads, 1)
    col_ok = (jnp.arange(n_pad) < n_valid)[None, :]
    scale = jnp.where(col_ok, jnp.exp(e2t - cmax), 0.0)            # (nheads, n_pad)
    scale_t = scale.T                                              # (n_pad, nheads)
    s_vals = wh.astype(jnp.float32) * jnp.repeat(scale_t, out_f, axis=1)
    s_ext = jnp.concatenate([s_vals, scale_t], axis=1).astype(jnp.bfloat16)

    flops = int(2 * nnz_tiles * ti * tj * hf_ext)
    bytes_acc = int(nnz_tiles * ti * tj                            # int8 adjacency
                    + 2 * n_pad * hf_ext                           # resident S_ext
                    + n_pad * hf * (2 if out_dtype == jnp.bfloat16 else 4))

    out = pl.pallas_call(
        functools.partial(gat_attn_kernel, tj=tj, max_cnt=max_cnt,
                          nheads=nheads, out_f=out_f,
                          apply_log_softmax=apply_log_softmax),
        out_shape=jax.ShapeDtypeStruct((n_pad, hf), out_dtype),
        grid_spec=pltpu.PrefetchScalarGridSpec(
            num_scalar_prefetch=2,                                 # cols, cnts
            grid=(ni, max_cnt),
            in_specs=[
                # adjacency tile picked by the block-sparse schedule
                pl.BlockSpec((ti, tj),
                             lambda i, j, cref, nref: (i, cref[i * max_cnt + j])),
                # scaled values + denominator columns: VMEM-resident (read once)
                pl.BlockSpec((n_pad, hf_ext), lambda i, j, cref, nref: (0, 0)),
            ],
            out_specs=pl.BlockSpec((ti, hf), lambda i, j, cref, nref: (i, 0)),
            scratch_shapes=[pltpu.VMEM((ti, hf_ext), jnp.float32)],
        ),
        compiler_params=pltpu.CompilerParams(
            dimension_semantics=("parallel", "arbitrary"),
            vmem_limit_bytes=32 * 1024 * 1024),
        cost_estimate=pl.CostEstimate(flops=flops, transcendentals=int(n_pad * hf),
                                      bytes_accessed=bytes_acc),
    )(cols, cnts, adj_i8, s_ext)
    return out


# ----------------------------------------------------------------------------
# Parameters / full forward
# ----------------------------------------------------------------------------
def xavier_uniform(key, shape, gain=1.414):
    fan_in, fan_out = shape[0], shape[1]
    limit = gain * (6.0 / (fan_in + fan_out)) ** 0.5
    return jax.random.uniform(key, shape, jnp.float32, -limit, limit)


def init_params(key, nfeat, nhid, nclass, nheads):
    keys = jax.random.split(key, 2 * nheads + 2)
    Ws, a1s, a2s = [], [], []
    for i in range(nheads):
        W = xavier_uniform(keys[2 * i], (nfeat, nhid))
        a = xavier_uniform(keys[2 * i + 1], (2 * nhid, 1))
        Ws.append(W)
        a1s.append(a[:nhid, 0])
        a2s.append(a[nhid:, 0])
    w_all1 = jnp.concatenate(Ws, axis=1)                      # (nfeat, nheads*nhid)
    a2_sel1 = jnp.zeros((nheads, nheads * nhid), jnp.float32)
    for h in range(nheads):
        a2_sel1 = a2_sel1.at[h, h * nhid:(h + 1) * nhid].set(a2s[h])

    W_out = xavier_uniform(keys[-2], (nhid * nheads, nclass))
    a_out = xavier_uniform(keys[-1], (2 * nclass, 1))
    a2_sel2 = a_out[nclass:, 0][None, :]                      # (1, nclass)

    kernel_params = {"layer1": (w_all1, a2_sel1), "layer2": (W_out, a2_sel2)}
    # a1 is only needed by the pure-JAX reference (it cancels in the softmax).
    ref_params = {"heads1": list(zip(Ws, a1s, a2s)),
                  "out": (W_out, a_out[:nclass, 0], a_out[nclass:, 0])}
    return kernel_params, ref_params


def gatv2_forward(params, x, adj, *, alpha):
    n = x.shape[0]
    n_pad, ti, tj = _choose_tiles(n)
    ni, nj = n_pad // ti, n_pad // tj

    # x = dropout(x) -> identity (eval semantics).
    x_pad = jnp.zeros((n_pad, x.shape[1]), jnp.float32).at[:n, :].set(x)

    # int8 0/1 adjacency: quarters the dominant (N,N) HBM stream vs f32.
    adj_np = (np.asarray(adj) > 0).astype(np.int8)
    adj_pad = np.zeros((n_pad, n_pad), np.int8)
    adj_pad[:n, :n] = adj_np

    # Host-side block-sparse schedule: for each row tile, the compacted list of
    # non-empty column tiles.  Padded slots repeat the last valid index so the
    # pipelined DMA sees an unchanged block index and skips the fetch.
    occ = adj_pad.reshape(ni, ti, nj, tj).sum(axis=(1, 3)) > 0    # (ni, nj)
    cnts_np = occ.sum(axis=1).astype(np.int32)
    max_cnt = max(1, int(cnts_np.max()))
    cols_np = np.zeros((ni, max_cnt), np.int32)
    for i in range(ni):
        nz = np.nonzero(occ[i])[0]
        if nz.size:
            cols_np[i, :nz.size] = nz
            cols_np[i, nz.size:] = nz[-1]
    cols = jnp.asarray(cols_np.reshape(-1))                       # 1-D SMEM table
    cnts = jnp.asarray(cnts_np)
    adj_i8 = jnp.asarray(adj_pad)
    nnz_tiles = int(cnts_np.sum())

    w1, a2_sel1 = params["layer1"]
    h1 = gat_layer(x_pad, w1, a2_sel1, adj_i8, cols, cnts, n_valid=n,
                   alpha=alpha, apply_log_softmax=False, ti=ti, tj=tj,
                   max_cnt=max_cnt, nnz_tiles=nnz_tiles,
                   out_dtype=jnp.bfloat16)                        # bf16 inter-layer

    # x = dropout(x) -> identity (eval semantics).
    w2, a2_sel2 = params["layer2"]
    out = gat_layer(h1, w2, a2_sel2, adj_i8, cols, cnts, n_valid=n,
                    alpha=alpha, apply_log_softmax=True, ti=ti, tj=tj,
                    max_cnt=max_cnt, nnz_tiles=nnz_tiles,
                    out_dtype=jnp.float32)
    return out[:n]


# ----------------------------------------------------------------------------
# Pure-JAX f32 reference (mirrors the torch module) for a sanity check
# ----------------------------------------------------------------------------
def _ref_head(x, W, a1, a2, adj, alpha):
    wh0 = x @ W
    wh = jnp.where(wh0 >= 0.0, wh0, alpha * wh0)
    e = (wh @ a1)[:, None] + (wh @ a2)[None, :]
    e = jnp.where(adj > 0, e, -1e30)
    m = jnp.max(e, axis=1, keepdims=True)
    p = jnp.where(adj > 0, jnp.exp(e - m), 0.0)
    att = p / jnp.sum(p, axis=1, keepdims=True)
    return att @ wh


def reference_forward(ref_params, x, adj, alpha):
    h1 = jnp.concatenate(
        [jax.nn.elu(_ref_head(x, W, a1, a2, adj, alpha))
         for (W, a1, a2) in ref_params["heads1"]], axis=1)
    W2, a12, a22 = ref_params["out"]
    h2 = jax.nn.elu(_ref_head(h1, W2, a12, a22, adj, alpha))
    return jax.nn.log_softmax(h2, axis=1)


if __name__ == "__main__":
    nnode, nfeat, nhid, nclass, nheads = 16, 16, 8, 4, 4
    alpha = 0.2

    key = jax.random.PRNGKey(0)
    kx, kp = jax.random.split(key)
    x = jax.random.normal(kx, (nnode, nfeat), jnp.float32)

    # Deterministic edge_index (2, E): self-loops + two ring neighbors per node.
    src, dst = [], []
    for i in range(nnode):
        for d in (0, 1, 2):
            src.append(i)
            dst.append((i + d) % nnode)
    edge_index = jnp.array([src, dst], dtype=jnp.int32)
    adj = jnp.zeros((nnode, nnode), jnp.float32).at[edge_index[0],
                                                    edge_index[1]].set(1.0)

    kernel_params, ref_params = init_params(kp, nfeat, nhid, nclass, nheads)

    out = gatv2_forward(kernel_params, x, adj, alpha=alpha)
    out = jax.block_until_ready(out)
    assert out.shape == (nnode, nclass)
    assert bool(jnp.all(jnp.isfinite(out)))

    ref = reference_forward(ref_params, x, adj, alpha)
    err = float(jnp.max(jnp.abs(out - ref)))
    assert err < 0.2, f"kernel/reference mismatch: max abs err {err}"

    print("KERNEL_OK")
</pallas_src>

<mosaic_0001>
module attributes {stable_mosaic.version = 11 : i64} {
  func.func @gat_proj_kernel(%arg0: i32, %arg1: memref<128x16xf32, #tpu.memory_space<vmem>>, %arg2: memref<16x32xbf16, #tpu.memory_space<vmem>>, %arg3: memref<4x32xf32, #tpu.memory_space<vmem>>, %arg4: memref<128x32xbf16, #tpu.memory_space<vmem>>, %arg5: memref<4x128xf32, #tpu.memory_space<vmem>>) attributes {dimension_semantics = [#tpu.dimension_semantics<parallel>], iteration_bounds = array<i64: 2>, scalar_prefetch = 0 : i64, scratch_operands = 0 : i64, tpu.core_type = #tpu.core_type<tc>, window_params = [{transform_indices = @transform_0, window_bounds = array<i64: 128, 16>}, {pipeline_mode = #tpu.pipeline_mode<synchronous>, transform_indices = @transform_1, window_bounds = array<i64: 16, 32>}, {pipeline_mode = #tpu.pipeline_mode<synchronous>, transform_indices = @transform_2, window_bounds = array<i64: 4, 32>}, {transform_indices = @transform_3, window_bounds = array<i64: 128, 32>}, {transform_indices = @transform_4, window_bounds = array<i64: 4, 128>}]} {
    %c0 = arith.constant 0 : index
    %c0_0 = arith.constant 0 : index
    %0 = vector.load %arg1[%c0, %c0_0] : memref<128x16xf32, #tpu.memory_space<vmem>>, vector<128x16xf32>
    %1 = arith.truncf %0 : vector<128x16xf32> to vector<128x16xbf16>
    %c0_1 = arith.constant 0 : index
    %c0_2 = arith.constant 0 : index
    %2 = vector.load %arg2[%c0_1, %c0_2] : memref<16x32xbf16, #tpu.memory_space<vmem>>, vector<16x32xbf16>
    %cst = arith.constant dense<0.000000e+00> : vector<128x32xf32>
    %3 = tpu.matmul %1, %2, %cst {dimension_numbers = #tpu.dot_dimension_numbers<[1], [0], [0], [1], [0, 0, 1, 1], [], []>} : vector<128x16xbf16>, vector<16x32xbf16>, vector<128x32xf32> -> vector<128x32xf32>
    %cst_3 = arith.constant 0.000000e+00 : f32
    %4 = vector.broadcast %cst_3 : f32 to vector<128x32xf32>
    %5 = arith.cmpf oge, %3, %4 : vector<128x32xf32>
    %cst_4 = arith.constant 2.000000e-01 : f32
    %6 = vector.broadcast %cst_4 : f32 to vector<128x32xf32>
    %7 = arith.mulf %6, %3 : vector<128x32xf32>
    %8 = arith.select %5, %3, %7 : vector<128x32xi1>, vector<128x32xf32>
    %9 = arith.truncf %8 : vector<128x32xf32> to vector<128x32xbf16>
    %c0_5 = arith.constant 0 : index
    %c0_6 = arith.constant 0 : index
    %10 = vector.load %arg4[%c0_5, %c0_6] : memref<128x32xbf16, #tpu.memory_space<vmem>>, vector<128x32xbf16>
    tpu.vector_store %arg4[%c0_5, %c0_6], %9 {strides = array<i32>} : memref<128x32xbf16, #tpu.memory_space<vmem>>, vector<128x32xbf16>,
    %c0_7 = arith.constant 0 : index
    %c0_8 = arith.constant 0 : index
    %11 = vector.load %arg3[%c0_7, %c0_8] : memref<4x32xf32, #tpu.memory_space<vmem>>, vector<4x32xf32>
    %cst_9 = arith.constant dense<0.000000e+00> : vector<4x128xf32>
    %12 = tpu.matmul %11, %8, %cst_9 {dimension_numbers = #tpu.dot_dimension_numbers<[1], [1], [0], [0], [0, 0, 1, 0], [], []>} : vector<4x32xf32>, vector<128x32xf32>, vector<4x128xf32> -> vector<4x128xf32>
    %c0_10 = arith.constant 0 : index
    %c0_11 = arith.constant 0 : index
    %13 = vector.load %arg5[%c0_10, %c0_11] : memref<4x128xf32, #tpu.memory_space<vmem>>, vector<4x128xf32>
    tpu.vector_store %arg5[%c0_10, %c0_11], %12 {strides = array<i32>} : memref<4x128xf32, #tpu.memory_space<vmem>>, vector<4x128xf32>,
    return
  }
  func.func @transform_0(%arg0: i32) -> (i32, i32) {
    %c0_i32 = arith.constant 0 : i32
    %c0_i32_0 = arith.constant 0 : i32
    return %arg0, %c0_i32 : i32, i32
  }
  func.func @transform_1(%arg0: i32) -> (i32, i32) {
    %c0_i32 = arith.constant 0 : i32
    %c0_i32_0 = arith.constant 0 : i32
    %c0_i32_1 = arith.constant 0 : i32
    return %c0_i32, %c0_i32_0 : i32, i32
  }
  func.func @transform_2(%arg0: i32) -> (i32, i32) {
    %c0_i32 = arith.constant 0 : i32
    %c0_i32_0 = arith.constant 0 : i32
    %c0_i32_1 = arith.constant 0 : i32
    return %c0_i32, %c0_i32_0 : i32, i32
  }
  func.func @transform_3(%arg0: i32) -> (i32, i32) {
    %c0_i32 = arith.constant 0 : i32
    %c0_i32_0 = arith.constant 0 : i32
    return %arg0, %c0_i32 : i32, i32
  }
  func.func @transform_4(%arg0: i32) -> (i32, i32) {
    %c0_i32 = arith.constant 0 : i32
    %c0_i32_0 = arith.constant 0 : i32
    return %c0_i32, %arg0 : i32, i32
  }
}

</mosaic_0001>

<bundles_post_ra>
// kernel: tpu_custom_call.1
= control target key start
LH: loop header
LB: loop body
LE: loop exit
PB: predicated region body
PF: predicated region fallthrough
CT: control target
= control target key end

     0   :  { %10 = vsyncpa [#allocation3], 0  ;;  %s1254_s0 = inlined_call_operand.vmem [shape: f32[256,16], index: 0, kind: input, shape index: {}]   ;;  %s1255_s1 = inlined_call_operand.vmem [shape: bf16[16,32], index: 1, kind: input, shape index: {}]   ;;  %s1256_s2 = inlined_call_operand.vmem [shape: f32[4,32], index: 2, kind: input, shape index: {}]   ;;  %s1257_s3 = inlined_call_operand.vmem [shape: bf16[256,32], index: 3, kind: output, shape index: {0}]   ;;  %s1258_s4 = inlined_call_operand.hbm [shape: f32[4,256], index: 4, kind: output, shape index: {1}]  }
   0x1   :  { %12 = vsyncpa [#allocation3 + $0x1], 0  ;;  %s1009_s15 = smov 0   ;;  %s1011_s16 = smov 0  }
   0x2   :  { %s1013_s17 = smov 0   ;;  %s1015_s18 = smov 0  }
   0x3 LB: > { %s1030_s19 = sadd.s32 4294967295, %s979_s18   ;;  %s727_s20 = sadd.s32 4294967294, %s979_s18   ;;  %s979_s18 = sphi %s1015_s18, %s1264_s18   ;;  %s975_s17 = sphi %s1013_s17, %s1263_s17   ;;  %s971_s16 = sphi %s1011_s16, %s1262_s16   ;;  %s967_s15 = sphi %s1009_s15, %s1261_s15  }
   0x4   : > { %s1034_s21 = sadd.s32 1, %s979_s18   ;;  %s119_s22 = sadd.s32 1, %s975_s17 }
   0x5   : > { %s116_s23 = ssub.s32 %s979_s18, %s1034_s21  ;;  %p129_p0 = scmp.ne.s32.totalorder %s975_s17, %s971_s16 }
   0x6   : > { %p117_p1 = scmp.eq.s32.totalorder %s116_s23, 0  ;;  %p130_p2 = scmp.eq.s32.totalorder %s1030_s19, 1 }
   0x7   : > { %p135_p3 = scmp.ne.s32.totalorder %s971_s16, %s967_s15  ;;  %p136_p4 = scmp.eq.s32.totalorder %s727_s20, 1 }
   0x8   : > { %s1045_s24 = scalar_select %p117_p1, %s975_s17, %s119_s22  }
   0x9   : > { %p1047_p5 = por %p130_p2, %p129_p0  ;;  %p1051_p6 = por %p136_p4, %p135_p3 }
   0xa   : > { %p730_p7 = scmp.ge.s32.totalorder %s979_s18, 1  ;;  %p169_p8 = scmp.lt.s32.totalorder %s979_s18, 3 }
   0xc   : > { %p170_p9 = pnand %p730_p7, %p169_p8 }
   0xd   : > { %s732_s29 = sshll.u32 (!%p170_p9), %s1030_s19, 4  ;;  %s197_s14 = sand.u32 (!%p170_p9), 1, %s971_s16  }
   0xe   : > { %173 = sbr.rel (%p170_p9) target bundleno = 520 (0x208), region = 32  ;;  %p201_p10 = scmp.lt.s32.totalorder (!%p170_p9), %s732_s29, 31 }
   0xf   : > { %s731_s20 = sshll.u32 (!%p170_p9), %s197_s14, 2  ;;  %s779_s27 = sshll.u32 (!%p170_p9), %s1030_s19, 6 }
  0x10   : > { %s199_s22 = scalar_lea.vmem (!%p170_p9), [#allocation2], %s731_s20  ;;  %s626_s5 = scalar_lea.sflag (!%p170_p9), [#allocation3], %s197_s14 }
  0x11   : > { %s643_s23 = sshll.u32 (!%p170_p9), %s199_s22, 4  ;;  %s983_s19 = smov (!%p170_p9), [#allocation2]   ;;  %s1210_s23 = int_to_ptr.vmem [resolvable:$true] %s643_s23 }
  0x12   : > { %s919_s6 = scalar_lea.vmem (!%p170_p9), %s1210_s23, 64 }
  0x13   : > { %v918_v0 = vld [vmem:[%s1255_s1] sm:$0xff]   ;;  %s1266_s29 = smov (!%p201_p10, %s732_s29), 31  ;;  %vm245_vm0 = vcmask 130048   ;;  %v981_v25 = vmov 0.0   ;;  %vm982_vm1 = vmmov 0   ;;  %vm479_vm4 = vcmask 257024   ;;  %p920_p11 = scmp.ne.s32.totalorder %s1210_s23, %s919_s6 }
  0x14   : > { %824 = vmatprep.subr.bf16.mxu0 %v918_v0  ;;  %s733_s30 = sshll.u32 %s1266_s29, 3  ;;  %842 = vmatprep.subr.mxu1 %v981_v25  ;;  %s735_s8 = sshll.u32 %s1266_s29, 2 }
  0x15   : > { %825 = vmatpush3.bf16.msra.mxu0 %v918_v0  ;;  %s1067_s7 = scalar_lea.vmem %s1254_s0, %s733_s30  ;;  %874 = vmatprep.mubr.msk.f32.mxu1 %vm982_vm1, %v981_v25  ;;  %s1099_s11 = scalar_lea.vmem %s1257_s3, %s735_s8 }
  0x16   : > { %v213_v1 = vld [vmem:[%s1067_s7] sm:$0xff]  ;;  %v214_v2 = vld [vmem:[%s1067_s7 + $0x8] sm:$0xff]  ;;  %v215_v3 = vld [vmem:[%s1067_s7 + $0x10] sm:$0xff]  ;;  %s1215_s30 = scalar_lea.hbm %s1258_s4, %s779_s27  ;;  %p921_p12 = pnand %p920_p11, %p1047_p5 }
  0x17   : > { %v229_v4 = vpack.c.bf16 %v214_v2, %v213_v1  ;;  %v216_v5 = vld [vmem:[%s1067_s7 + $0x18] sm:$0xff]  ;;  %v217_v6 = vld [vmem:[%s1067_s7 + $0x20] sm:$0xff]  ;;  %v218_v7 = vld [vmem:[%s1067_s7 + $0x28] sm:$0xff] }
  0x18   : > { %v230_v8 = vpack.c.bf16 %v216_v5, %v215_v3  ;;  %v231_v9 = vpack.c.bf16 %v218_v7, %v217_v6  ;;  %v219_v10 = vld [vmem:[%s1067_s7 + $0x30] sm:$0xff]  ;;  %v220_v11 = vld [vmem:[%s1067_s7 + $0x38] sm:$0xff]  ;;  %v221_v12 = vld [vmem:[%s1067_s7 + $0x40] sm:$0xff]  ;;  %p922_p13 = pneg %p921_p12 }
  0x19   : > { %826 = vmatprep.mubr.msk.bf16.mxu0 %vm245_vm0, %v229_v4  ;;  %v222_v13 = vld [vmem:[%s1067_s7 + $0x48] sm:$0xff]  ;;  %v232_v14 = vpack.c.bf16 %v220_v11, %v219_v10  ;;  %v223_v16 = vld [vmem:[%s1067_s7 + $0x50] sm:$0xff]  ;;  %v224_v17 = vld [vmem:[%s1067_s7 + $0x58] sm:$0xff] }
  0x1a   : > { %827 = vmatmul.mubr.msk.bf16.vlgmr.msra.gmra.mxu0 %vm245_vm0, %v230_v8  ;;  %v233_v15 = vpack.c.bf16 %v222_v13, %v221_v12  ;;  %v225_v18 = vld [vmem:[%s1067_s7 + $0x60] sm:$0xff]  ;;  %v226_v19 = vld [vmem:[%s1067_s7 + $0x68] sm:$0xff]  ;;  %v234_v20 = vpack.c.bf16 %v224_v17, %v223_v16  ;;  %v227_v22 = vld [vmem:[%s1067_s7 + $0x70] sm:$0xff] }
  0x1b   : > { %830 = vmatprep.mubr.msk.bf16.mxu0 %vm245_vm0, %v231_v9  ;;  %v235_v21 = vpack.c.bf16 %v226_v19, %v225_v18  ;;  %v228_v23 = vld [vmem:[%s1067_s7 + $0x78] sm:$0xff]  ;;  %s923_s7 = sshll.u32 %s983_s19, 4  ;;  %s924_s7 = int_to_ptr.vmem [resolvable:$false] %s923_s7 }
  0x1c   : > { %v236_v24 = vpack.c.bf16 %v228_v23, %v227_v22  ;;  %s925_s8 = scalar_lea.vmem %s924_s7, 128  ;;  %p926_p0 = scmp.lt.s32.totalorder %s1210_s23, %s924_s7 }
  0x1d   : > { %p927_p1 = scmp.lt.s32.totalorder %s925_s8, %s919_s6 }
  0x1f   : > { %p928_p2 = por %p927_p1, %p926_p0 }
  0x21   : > { %p929_p3 = pnand %p928_p2, %p922_p13 }
  0x22   : > { %831 = vmatmul.mubr.msk.bf16.gmra.mxu0 %vm245_vm0, %v232_v14 }
  0x23   : > { %834 = vmatprep.mubr.msk.bf16.mxu0 %vm245_vm0, %v233_v15 }
  0x2a   : > { %835 = vmatmul.mubr.msk.bf16.gmra.mxu0 %vm245_vm0, %v234_v20 }
  0x2b   : > { %838 = vmatprep.mubr.msk.bf16.mxu0 %vm245_vm0, %v235_v21 }
  0x32   : > { %839 = vmatmul.mubr.msk.bf16.gmra.mxu0 %vm245_vm0, %v236_v24 }
  0xda   : > { %v828_v26 = vpop.f32.mrf.mxu0 }
  0xdb   : > { %vm369_vm2 = vcmp.ge.f32.partialorder %v828_v26, 0.0  ;;  %v385_v27 = vmul.f32 0.2, %v828_v26 }
  0xdc   : > { %v304_v28 = vpop.f32.mrf.mxu0 }
  0xdd   : > { %vm367_vm3 = vcmp.ge.f32.partialorder %v304_v28, 0.0  ;;  %v383_v29 = vmul.f32 0.2, %v304_v28  ;;  %v1101_v30 = vsel %vm369_vm2, %v828_v26, %v385_v27  ;;  %vm497_vm2 = vcmask 261120   ;;  %v496_v27 = vld [vmem:[%s1256_s2] sm:$0xf] }
  0xde   : > { %v829_v31 = vpop.f32.mrf.mxu0  ;;  %v784_v32 = vpack.c.bf16 %v1101_v30, %v1101_v30 }
  0xdf   : > { %vm370_vm5 = vcmp.ge.f32.partialorder %v829_v31, 0.0  ;;  %v386_v33 = vmul.f32 0.2, %v829_v31  ;;  %v1105_v34 = vsel %vm367_vm3, %v304_v28, %v383_v29 }
  0xe0   : > { %v307_v35 = vpop.f32.mrf.mxu0  ;;  %482 = vst.msk [vmem:[%s1099_s11 + $0x8] sm:$0xf] %vm479_vm4, %v784_v32  ;;  %v782_v36 = vpack.c.bf16 %v1105_v34, %v1105_v34 }
  0xe1   : > { %vm368_vm6 = vcmp.ge.f32.partialorder %v307_v35, 0.0  ;;  %v384_v37 = vmul.f32 0.2, %v307_v35  ;;  %v1111_v38 = vsel %vm370_vm5, %v829_v31, %v386_v33 }
  0xe2   : > { %v832_v39 = vpop.f32.mrf.mxu0  ;;  %v785_v40 = vpack.c.bf16 %v1111_v38, %v1111_v38  ;;  %480 = vst.msk [vmem:[%s1099_s11] sm:$0xf] %vm479_vm4, %v782_v36 }
  0xe3   : > { %vm373_vm7 = vcmp.ge.f32.partialorder %v832_v39, 0.0  ;;  %v389_v41 = vmul.f32 0.2, %v832_v39  ;;  %v1117_v42 = vsel %vm368_vm6, %v307_v35, %v384_v37 }
  0xe4   : > { %v320_v43 = vpop.f32.mrf.mxu0  ;;  %483 = vst.msk [vmem:[%s1099_s11 + $0xc] sm:$0xf] %vm479_vm4, %v785_v40  ;;  %v783_v44 = vpack.c.bf16 %v1117_v42, %v1117_v42 }
  0xe5   : > { %vm371_vm8 = vcmp.ge.f32.partialorder %v320_v43, 0.0  ;;  %v387_v45 = vmul.f32 0.2, %v320_v43  ;;  %v1123_v46 = vsel %vm373_vm7, %v832_v39, %v389_v41 }
  0xe6   : > { %v833_v47 = vpop.f32.mrf.mxu0  ;;  %v788_v48 = vpack.c.bf16 %v1123_v46, %v1123_v46  ;;  %481 = vst.msk [vmem:[%s1099_s11 + $0x4] sm:$0xf] %vm479_vm4, %v783_v44 }
  0xe7   : > { %vm374_vm9 = vcmp.ge.f32.partialorder %v833_v47, 0.0  ;;  %v390_v49 = vmul.f32 0.2, %v833_v47  ;;  %v1129_v50 = vsel %vm371_vm8, %v320_v43, %v387_v45 }
  0xe8   : > { %v323_v51 = vpop.f32.mrf.mxu0  ;;  %486 = vst.msk [vmem:[%s1099_s11 + $0x18] sm:$0xf] %vm479_vm4, %v788_v48  ;;  %v786_v52 = vpack.c.bf16 %v1129_v50, %v1129_v50 }
  0xe9   : > { %vm372_vm10 = vcmp.ge.f32.partialorder %v323_v51, 0.0  ;;  %v388_v53 = vmul.f32 0.2, %v323_v51  ;;  %v1135_v54 = vsel %vm374_vm9, %v833_v47, %v390_v49 }
  0xea   : > { %v836_v55 = vpop.f32.mrf.mxu0  ;;  %v789_v56 = vpack.c.bf16 %v1135_v54, %v1135_v54  ;;  %484 = vst.msk [vmem:[%s1099_s11 + $0x10] sm:$0xf] %vm479_vm4, %v786_v52 }
  0xeb   : > { %vm377_vm11 = vcmp.ge.f32.partialorder %v836_v55, 0.0  ;;  %v393_v57 = vmul.f32 0.2, %v836_v55  ;;  %v1141_v58 = vsel %vm372_vm10, %v323_v51, %v388_v53 }
  0xec   : > { %v336_v59 = vpop.f32.mrf.mxu0  ;;  %487 = vst.msk [vmem:[%s1099_s11 + $0x1c] sm:$0xf] %vm479_vm4, %v789_v56  ;;  %v787_v60 = vpack.c.bf16 %v1141_v58, %v1141_v58 }
  0xed   : > { %vm375_vm12 = vcmp.ge.f32.partialorder %v336_v59, 0.0  ;;  %v391_v61 = vmul.f32 0.2, %v336_v59  ;;  %v409_v62 = vsel %vm377_vm11, %v836_v55, %v393_v57 }
  0xee   : > { %v837_v63 = vpop.f32.mrf.mxu0  ;;  %v792_v0 = vpack.c.bf16 %v409_v62, %v409_v62  ;;  %485 = vst.msk [vmem:[%s1099_s11 + $0x14] sm:$0xf] %vm479_vm4, %v787_v60 }
  0xef   : > { %vm378_vm13 = vcmp.ge.f32.partialorder %v837_v63, 0.0  ;;  %v394_v1 = vmul.f32 0.2, %v837_v63  ;;  %v407_v2 = vsel %vm375_vm12, %v336_v59, %v391_v61 }
  0xf0   : > { %v339_v3 = vpop.f32.mrf.mxu0  ;;  %490 = vst.msk [vmem:[%s1099_s11 + $0x28] sm:$0xf] %vm479_vm4, %v792_v0  ;;  %v790_v4 = vpack.c.bf16 %v407_v2, %v407_v2 }
  0xf1   : > { %vm376_vm14 = vcmp.ge.f32.partialorder %v339_v3, 0.0  ;;  %v392_v5 = vmul.f32 0.2, %v339_v3  ;;  %v410_v6 = vsel %vm378_vm13, %v837_v63, %v394_v1 }
  0xf2   : > { %v840_v7 = vpop.f32.mrf.mxu0  ;;  %v793_v8 = vpack.c.bf16 %v410_v6, %v410_v6  ;;  %488 = vst.msk [vmem:[%s1099_s11 + $0x20] sm:$0xf] %vm479_vm4, %v790_v4 }
  0xf3   : > { %vm381_vm15 = vcmp.ge.f32.partialorder %v840_v7, 0.0  ;;  %v397_v9 = vmul.f32 0.2, %v840_v7  ;;  %v408_v10 = vsel %vm376_vm14, %v339_v3, %v392_v5 }
  0xf4   : > { %v352_v11 = vpop.f32.mrf.mxu0  ;;  %491 = vst.msk [vmem:[%s1099_s11 + $0x2c] sm:$0xf] %vm479_vm4, %v793_v8  ;;  %v791_v12 = vpack.c.bf16 %v408_v10, %v408_v10 }
  0xf5   : > { %vm379_vm0 = vcmp.ge.f32.partialorder %v352_v11, 0.0  ;;  %v395_v13 = vmul.f32 0.2, %v352_v11  ;;  %v413_v14 = vsel %vm381_vm15, %v840_v7, %v397_v9 }
  0xf6   : > { %v841_v15 = vpop.f32.mrf.mxu0  ;;  %v796_v16 = vpack.c.bf16 %v413_v14, %v413_v14  ;;  %489 = vst.msk [vmem:[%s1099_s11 + $0x24] sm:$0xf] %vm479_vm4, %v791_v12 }
  0xf7   : > { %vm382_vm1 = vcmp.ge.f32.partialorder %v841_v15, 0.0  ;;  %v398_v17 = vmul.f32 0.2, %v841_v15  ;;  %v411_v18 = vsel %vm379_vm0, %v352_v11, %v395_v13 }
  0xf8   : > { %v355_v19 = vpop.f32.mrf.mxu0  ;;  %494 = vst.msk [vmem:[%s1099_s11 + $0x38] sm:$0xf] %vm479_vm4, %v796_v16  ;;  %v794_v20 = vpack.c.bf16 %v411_v18, %v411_v18 }
  0xf9   : > { %vm380_vm3 = vcmp.ge.f32.partialorder %v355_v19, 0.0  ;;  %v396_v21 = vmul.f32 0.2, %v355_v19  ;;  %v414_v22 = vsel %vm382_vm1, %v841_v15, %v398_v17 }
  0xfa   : > { %v797_v23 = vpack.c.bf16 %v414_v22, %v414_v22  ;;  %843 = vmatpush3.xpose.msk.msra.mxu1 %vm497_vm2, %v414_v22  ;;  %492 = vst.msk [vmem:[%s1099_s11 + $0x30] sm:$0xf] %vm479_vm4, %v794_v20 }
  0xfb   : > { %v412_v24 = vsel %vm380_vm3, %v355_v19, %v396_v21  ;;  %844 = vmatprep.subr.mxu1 %v981_v25 }
  0xfc   : > { %v795_v26 = vpack.c.bf16 %v412_v24, %v412_v24  ;;  %495 = vst.msk [vmem:[%s1099_s11 + $0x3c] sm:$0xf] %vm479_vm4, %v797_v23 }
  0xfe   : > { %493 = vst.msk [vmem:[%s1099_s11 + $0x34] sm:$0xf] %vm479_vm4, %v795_v26  ;;  %845 = vmatpush3.xpose.msk.msra.mxu1 %vm497_vm2, %v413_v14 }
  0xff   : > { %846 = vmatprep.subr.mxu1 %v981_v25 }
 0x102   : > { %847 = vmatpush3.xpose.msk.msra.mxu1 %vm497_vm2, %v412_v24 }
 0x103   : > { %848 = vmatprep.subr.mxu1 %v981_v25 }
 0x106   : > { %849 = vmatpush3.xpose.msk.msra.mxu1 %vm497_vm2, %v411_v18 }
 0x107   : > { %850 = vmatprep.subr.mxu1 %v981_v25 }
 0x10a   : > { %851 = vmatpush3.xpose.msk.msra.mxu1 %vm497_vm2, %v410_v6 }
 0x10b   : > { %852 = vmatprep.subr.mxu1 %v981_v25 }
 0x10e   : > { %853 = vmatpush3.xpose.msk.msra.mxu1 %vm497_vm2, %v409_v62 }
 0x10f   : > { %854 = vmatprep.subr.mxu1 %v981_v25 }
 0x112   : > { %855 = vmatpush3.xpose.msk.msra.mxu1 %vm497_vm2, %v408_v10 }
 0x113   : > { %856 = vmatprep.subr.mxu1 %v981_v25 }
 0x116   : > { %857 = vmatpush3.xpose.msk.msra.mxu1 %vm497_vm2, %v407_v2 }
 0x117   : > { %858 = vmatprep.subr.mxu1 %v981_v25 }
 0x11a   : > { %859 = vmatpush3.xpose.msk.msra.mxu1 %vm497_vm2, %v1135_v54 }
 0x11b   : > { %860 = vmatprep.subr.mxu1 %v981_v25 }
 0x11e   : > { %861 = vmatpush3.xpose.msk.msra.mxu1 %vm497_vm2, %v1123_v46 }
 0x11f   : > { %862 = vmatprep.subr.mxu1 %v981_v25 }
 0x122   : > { %863 = vmatpush3.xpose.msk.msra.mxu1 %vm497_vm2, %v1141_v58 }
 0x123   : > { %864 = vmatprep.subr.mxu1 %v981_v25 }
 0x126   : > { %865 = vmatpush3.xpose.msk.msra.mxu1 %vm497_vm2, %v1129_v50 }
 0x127   : > { %866 = vmatprep.subr.mxu1 %v981_v25 }
 0x12a   : > { %867 = vmatpush3.xpose.msk.msra.mxu1 %vm497_vm2, %v1111_v38 }
 0x12b   : > { %868 = vmatprep.subr.mxu1 %v981_v25 }
 0x12e   : > { %869 = vmatpush3.xpose.msk.msra.mxu1 %vm497_vm2, %v1101_v30 }
 0x12f   : > { %870 = vmatprep.subr.mxu1 %v981_v25 }
 0x132   : > { %871 = vmatpush3.xpose.msk.msra.mxu1 %vm497_vm2, %v1117_v42 }
 0x133   : > { %872 = vmatprep.subr.mxu1 %v981_v25 }
 0x136   : > { %873 = vmatpush3.xpose.msk.msra.mxu1 %vm497_vm2, %v1105_v34 }
 0x139   : > { %875 = vmatmul.mubr.msk.f32.vlgmr.msra.gmra.mxu1 %vm497_vm2, %v496_v27 }
 0x1f9   : > { %v615_v25 = vpop.f32.mrf.mxu1 }
 0x1fa   : > { %619 = vst [vmem:[%s199_s22] sm:$0xf] %v615_v25 }
 0x1fb   : > { %v876_v28 = vpop.f32.mrf.mxu1 }
 0x1fc   : > { %932 = shalt.err (!%p929_p3)
}
 0x1fd   : > { %s933_s9 = scalar_lea.hbm %s1215_s30, 64  ;;  %s937_s12 = scalar_lea.hbm %s1258_s4, 128 }
 0x1fe   : > { %p934_p4 = scmp.ne.s32.totalorder %s1215_s30, %s933_s9  ;;  %p938_p9 = scmp.lt.s32.totalorder %s1215_s30, %s1258_s4 }
 0x1ff   : > { %p939_p10 = scmp.lt.s32.totalorder %s937_s12, %s933_s9 }
 0x200   : > { %p935_p7 = pnand %p934_p4, %p1047_p5 }
 0x201   : > { %p940_p11 = por %p939_p10, %p938_p9 }
 0x202   : > { %p936_p8 = pneg %p935_p7 }
 0x204   : > { %p941_p12 = pnand %p940_p11, %p936_p8 }
 0x206   : > { %944 = shalt.err (!%p941_p12)
}
 0x207   : > { %877 = dma.vmem_to_hbm [thread:$0]  (%p1047_p5), %s1210_s23, 64, %s1215_s30, %s626_s5  }
 0x208 PF: > { %p883_p13 = scmp.ge.s32.totalorder %s979_s18, 2  ;;  %s663_s20 = sand.u32 1, %s967_s15  }
 0x209   : > { %s664_s22 = scalar_lea.sflag [#allocation3], %s663_s20 }
 0x20a   : > { %p880_p0 = pnand %p883_p13, %p1051_p6 }
 0x20c   : > { %p881_p1 = pneg %p880_p0 }
 0x20e   : > { %962 = dma.done.wait (%p881_p1), %s664_s22, 64  }
 0x20f   : > { %964 = vsyncadd (%p881_p1), %s664_s22, 4294967232  ;;  %p15_p2 = scmp.ge.s32.totalorder %s1034_s21, 4   ;;  %s1261_s15 = smov %s971_s16 }
 0x210   : > { %s1262_s16 = smov %s975_s17  ;;  %s1263_s17 = smov %s1045_s24 }
 0x211   : > { %s1264_s18 = smov %s1034_s21  ;;  %17 = sbr.rel (!%p15_p2) target bundleno = 3 (0x3), region = 79 }
 0x216   :  { %669 = vsyncpa [#allocation3], 1 }
 0x217   :  { %671 = vsyncpa [#allocation3 + $0x1], 1 }

</bundles_post_ra>
